<compile_context>
chip_gen: v7x
topology: tpu7x:2x2x1
jax: 0.10.0
libtpu: 0.0.40
codegen_flags: <defaults>
</compile_context>

<pallas_src>
import jax
import jax.numpy as jnp
from jax.experimental import pallas as pl
from jax.experimental.pallas import tpu as pltpu


def _round_up(x, m):
    return (x + m - 1) // m * m


def _pick_tile_n(N, M, D, H, itemsize):
    """Rows-per-tile: VMEM-budgeted, multiple of 8, >=2 grid steps when possible."""
    # Per-node VMEM bytes: z tile double-buffered (2 pipeline buffers) + the
    # dominant f32 intermediates (one (tn,H) h at a time, scores, output row).
    per_node = 2 * M * D * itemsize + 4 * (H + D + 4 * M)
    budget = 16 * 1024 * 1024          # conservative: fits v7x's 64 MiB VMEM w/ headroom
    tn = budget // max(per_node, 1)
    tn = min(tn, 512)                  # per-step overhead already amortized at 512 rows
    # Keep at least two grid steps so the parallel axis splits across 2 TCs (v7x).
    tn = min(tn, max(8, _round_up(pl.cdiv(N, 2), 8)))
    tn = max(8, (tn // 8) * 8)
    return int(tn)


def _semantic_attention_kernel(z_ref, w1_ref, b1_ref, w2_ref, o_ref):
    tn, M, D = z_ref.shape

    w1 = w1_ref[...]                         # (D, H) — input dtype, straight to MXU
    b1 = b1_ref[...].astype(jnp.float32)     # (1, H)
    w2 = w2_ref[...].astype(jnp.float32)     # (1, H)

    # ---- per-channel attention scores: w2 . tanh(z_m @ W1 + b1) -------------
    # M is small and static -> unroll.  The hidden->1 projection is a VPU
    # multiply + lane reduction (no width-1 MXU pass).
    scores = []
    for m in range(M):
        zm = z_ref[:, m, :]                                          # (tn, D)
        h = jnp.dot(zm, w1, preferred_element_type=jnp.float32)      # (tn, H) f32
        h = jnp.tanh(h + b1)
        scores.append(jnp.sum(h * w2, axis=-1, keepdims=True))       # (tn, 1) f32

    # ---- softmax over the semantic axis (torch dim=1), exact, in f32 --------
    s_max = scores[0]
    for s in scores[1:]:
        s_max = jnp.maximum(s_max, s)
    exps = [jnp.exp(s - s_max) for s in scores]
    denom = exps[0]
    for e in exps[1:]:
        denom = denom + e
    inv = 1.0 / denom                       # exact normalization (approx=True removed)

    # ---- weighted reduction over M: sum_m beta_m * z_m, f32 accumulation ----
    acc = jnp.zeros((tn, D), dtype=jnp.float32)
    for m in range(M):
        beta_m = exps[m] * inv                                       # (tn, 1)
        acc = acc + beta_m * z_ref[:, m, :].astype(jnp.float32)
    o_ref[...] = acc.astype(o_ref.dtype)


def semantic_attention(z, w1, b1, w2, *, tile_n=None):
    """HAN semantic attention.

    z : (N, M, D)   stacked per-metapath embeddings
    w1: (D, H)      first projection weight (transposed vs. nn.Linear.weight)
    b1: (H,)        first projection bias
    w2: (H, 1)      second projection weight (no bias)
    -> (N, D)
    """
    N, M, D = z.shape
    H = w1.shape[1]

    tn = tile_n if tile_n is not None else _pick_tile_n(N, M, D, H, z.dtype.itemsize)
    tn = max(8, _round_up(min(int(tn), max(N, 1)), 8))
    n_pad = _round_up(N, tn)
    zp = z if n_pad == N else jnp.pad(z, ((0, n_pad - N), (0, 0), (0, 0)))

    b1_row = b1.reshape(1, H)
    w2_row = w2.reshape(1, H)

    grid = (n_pad // tn,)
    out = pl.pallas_call(
        _semantic_attention_kernel,
        out_shape=jax.ShapeDtypeStruct((n_pad, D), z.dtype),
        grid_spec=pltpu.PrefetchScalarGridSpec(
            num_scalar_prefetch=0,
            grid=grid,
            in_specs=[
                pl.BlockSpec((tn, M, D), lambda i: (i, 0, 0)),   # z (single stream)
                # Constant-index weight operands; could be single-buffered via
                # pipeline_mode=pl.Buffered(1) for extra VMEM headroom at large D, H.
                pl.BlockSpec((D, H), lambda i: (0, 0)),          # W1
                pl.BlockSpec((1, H), lambda i: (0, 0)),          # b1
                pl.BlockSpec((1, H), lambda i: (0, 0)),          # w2
            ],
            out_specs=pl.BlockSpec((tn, D), lambda i: (i, 0)),
        ),
        compiler_params=pltpu.CompilerParams(
            # One parallel axis over node tiles; no vmem_limit_bytes override —
            # the budgeted tile stays well under the default scoped limit even
            # on v7x (64 MiB physical VMEM per TensorCore).
            dimension_semantics=("parallel",),
        ),
    )(zp, w1, b1_row, w2_row)

    return out if n_pad == N else out[:N]


def semantic_attention_ref(z, w1, b1, w2):
    """Plain-JAX reference mirroring the PyTorch module."""
    w = jnp.tanh(z @ w1 + b1) @ w2                  # (N, M, 1)
    beta = jax.nn.softmax(w, axis=1)
    return (beta * z).sum(axis=1)


if __name__ == "__main__":
    # Small shapes consistent with the module: z is (N, M, in_size), hidden=128.
    N, M, in_size, hidden = 16, 4, 32, 128

    key = jax.random.PRNGKey(0)
    kz, k1, kb, k2 = jax.random.split(key, 4)
    z = jax.random.normal(kz, (N, M, in_size), dtype=jnp.float32)
    w1 = jax.random.normal(k1, (in_size, hidden), dtype=jnp.float32) * 0.1
    b1 = jax.random.normal(kb, (hidden,), dtype=jnp.float32) * 0.1
    w2 = jax.random.normal(k2, (hidden, 1), dtype=jnp.float32) * 0.1

    # Heuristic tiling gives tn=8 here -> 2 grid steps (both v7x TCs get work).
    out = jax.block_until_ready(semantic_attention(z, w1, b1, w2))
    ref = semantic_attention_ref(z, w1, b1, w2)
    assert out.shape == (N, in_size)
    assert jnp.allclose(out, ref, atol=1e-4, rtol=1e-4), "mismatch vs reference"

    # Exercise the padded-tail path (N not a multiple of the tile).
    z_odd = z[:13]
    out_odd = jax.block_until_ready(semantic_attention(z_odd, w1, b1, w2))
    ref_odd = semantic_attention_ref(z_odd, w1, b1, w2)
    assert out_odd.shape == (13, in_size)
    assert jnp.allclose(out_odd, ref_odd, atol=1e-4, rtol=1e-4), "tail mismatch"

    print("KERNEL_OK")
</pallas_src>

<mosaic_0001>
module attributes {stable_mosaic.version = 11 : i64} {
  func.func @_semantic_attention_kernel(%arg0: i32, %arg1: memref<8x4x32xf32, #tpu.memory_space<vmem>>, %arg2: memref<32x128xf32, #tpu.memory_space<vmem>>, %arg3: memref<1x128xf32, #tpu.memory_space<vmem>>, %arg4: memref<1x128xf32, #tpu.memory_space<vmem>>, %arg5: memref<8x32xf32, #tpu.memory_space<vmem>>) attributes {dimension_semantics = [#tpu.dimension_semantics<parallel>], iteration_bounds = array<i64: 2>, scalar_prefetch = 0 : i64, scratch_operands = 0 : i64, tpu.core_type = #tpu.core_type<tc>, window_params = [{transform_indices = @transform_0, window_bounds = array<i64: 8, 4, 32>}, {pipeline_mode = #tpu.pipeline_mode<synchronous>, transform_indices = @transform_1, window_bounds = array<i64: 32, 128>}, {pipeline_mode = #tpu.pipeline_mode<synchronous>, transform_indices = @transform_2, window_bounds = array<i64: 1, 128>}, {pipeline_mode = #tpu.pipeline_mode<synchronous>, transform_indices = @transform_3, window_bounds = array<i64: 1, 128>}, {transform_indices = @transform_4, window_bounds = array<i64: 8, 32>}]} {
    %c0 = arith.constant 0 : index
    %c0_0 = arith.constant 0 : index
    %0 = vector.load %arg2[%c0, %c0_0] : memref<32x128xf32, #tpu.memory_space<vmem>>, vector<32x128xf32>
    %c0_1 = arith.constant 0 : index
    %c0_2 = arith.constant 0 : index
    %1 = vector.load %arg3[%c0_1, %c0_2] : memref<1x128xf32, #tpu.memory_space<vmem>>, vector<1x128xf32>
    %c0_3 = arith.constant 0 : index
    %c0_4 = arith.constant 0 : index
    %2 = vector.load %arg4[%c0_3, %c0_4] : memref<1x128xf32, #tpu.memory_space<vmem>>, vector<1x128xf32>
    %c0_5 = arith.constant 0 : index
    %c0_6 = arith.constant 0 : index
    %c0_7 = arith.constant 0 : index
    %3 = vector.load %arg1[%c0_5, %c0_6, %c0_7] : memref<8x4x32xf32, #tpu.memory_space<vmem>>, vector<8x1x32xf32>
    %4 = vector.shape_cast %3 : vector<8x1x32xf32> to vector<8x32xf32>
    %cst = arith.constant dense<0.000000e+00> : vector<8x128xf32>
    %5 = tpu.matmul %4, %0, %cst {dimension_numbers = #tpu.dot_dimension_numbers<[1], [0], [0], [1], [0, 0, 1, 1], [], []>} : vector<8x32xf32>, vector<32x128xf32>, vector<8x128xf32> -> vector<8x128xf32>
    %6 = vector.broadcast %1 : vector<1x128xf32> to vector<8x128xf32>
    %7 = arith.addf %5, %6 : vector<8x128xf32>
    %8 = math.tanh %7 : vector<8x128xf32>
    %9 = vector.broadcast %2 : vector<1x128xf32> to vector<8x128xf32>
    %10 = arith.mulf %8, %9 : vector<8x128xf32>
    %cst_8 = arith.constant dense<0.000000e+00> : vector<8xf32>
    %11 = vector.multi_reduction <add>, %10, %cst_8 [1] : vector<8x128xf32> to vector<8xf32>
    %12 = vector.shape_cast %11 : vector<8xf32> to vector<8x1xf32>
    %c0_9 = arith.constant 0 : index
    %c1 = arith.constant 1 : index
    %c0_10 = arith.constant 0 : index
    %13 = vector.load %arg1[%c0_9, %c1, %c0_10] : memref<8x4x32xf32, #tpu.memory_space<vmem>>, vector<8x1x32xf32>
    %14 = vector.shape_cast %13 : vector<8x1x32xf32> to vector<8x32xf32>
    %cst_11 = arith.constant dense<0.000000e+00> : vector<8x128xf32>
    %15 = tpu.matmul %14, %0, %cst_11 {dimension_numbers = #tpu.dot_dimension_numbers<[1], [0], [0], [1], [0, 0, 1, 1], [], []>} : vector<8x32xf32>, vector<32x128xf32>, vector<8x128xf32> -> vector<8x128xf32>
    %16 = vector.broadcast %1 : vector<1x128xf32> to vector<8x128xf32>
    %17 = arith.addf %15, %16 : vector<8x128xf32>
    %18 = math.tanh %17 : vector<8x128xf32>
    %19 = vector.broadcast %2 : vector<1x128xf32> to vector<8x128xf32>
    %20 = arith.mulf %18, %19 : vector<8x128xf32>
    %cst_12 = arith.constant dense<0.000000e+00> : vector<8xf32>
    %21 = vector.multi_reduction <add>, %20, %cst_12 [1] : vector<8x128xf32> to vector<8xf32>
    %22 = vector.shape_cast %21 : vector<8xf32> to vector<8x1xf32>
    %c0_13 = arith.constant 0 : index
    %c2 = arith.constant 2 : index
    %c0_14 = arith.constant 0 : index
    %23 = vector.load %arg1[%c0_13, %c2, %c0_14] : memref<8x4x32xf32, #tpu.memory_space<vmem>>, vector<8x1x32xf32>
    %24 = vector.shape_cast %23 : vector<8x1x32xf32> to vector<8x32xf32>
    %cst_15 = arith.constant dense<0.000000e+00> : vector<8x128xf32>
    %25 = tpu.matmul %24, %0, %cst_15 {dimension_numbers = #tpu.dot_dimension_numbers<[1], [0], [0], [1], [0, 0, 1, 1], [], []>} : vector<8x32xf32>, vector<32x128xf32>, vector<8x128xf32> -> vector<8x128xf32>
    %26 = vector.broadcast %1 : vector<1x128xf32> to vector<8x128xf32>
    %27 = arith.addf %25, %26 : vector<8x128xf32>
    %28 = math.tanh %27 : vector<8x128xf32>
    %29 = vector.broadcast %2 : vector<1x128xf32> to vector<8x128xf32>
    %30 = arith.mulf %28, %29 : vector<8x128xf32>
    %cst_16 = arith.constant dense<0.000000e+00> : vector<8xf32>
    %31 = vector.multi_reduction <add>, %30, %cst_16 [1] : vector<8x128xf32> to vector<8xf32>
    %32 = vector.shape_cast %31 : vector<8xf32> to vector<8x1xf32>
    %c0_17 = arith.constant 0 : index
    %c3 = arith.constant 3 : index
    %c0_18 = arith.constant 0 : index
    %33 = vector.load %arg1[%c0_17, %c3, %c0_18] : memref<8x4x32xf32, #tpu.memory_space<vmem>>, vector<8x1x32xf32>
    %34 = vector.shape_cast %33 : vector<8x1x32xf32> to vector<8x32xf32>
    %cst_19 = arith.constant dense<0.000000e+00> : vector<8x128xf32>
    %35 = tpu.matmul %34, %0, %cst_19 {dimension_numbers = #tpu.dot_dimension_numbers<[1], [0], [0], [1], [0, 0, 1, 1], [], []>} : vector<8x32xf32>, vector<32x128xf32>, vector<8x128xf32> -> vector<8x128xf32>
    %36 = vector.broadcast %1 : vector<1x128xf32> to vector<8x128xf32>
    %37 = arith.addf %35, %36 : vector<8x128xf32>
    %38 = math.tanh %37 : vector<8x128xf32>
    %39 = vector.broadcast %2 : vector<1x128xf32> to vector<8x128xf32>
    %40 = arith.mulf %38, %39 : vector<8x128xf32>
    %cst_20 = arith.constant dense<0.000000e+00> : vector<8xf32>
    %41 = vector.multi_reduction <add>, %40, %cst_20 [1] : vector<8x128xf32> to vector<8xf32>
    %42 = vector.shape_cast %41 : vector<8xf32> to vector<8x1xf32>
    %43 = arith.maximumf %12, %22 : vector<8x1xf32>
    %44 = arith.maximumf %43, %32 : vector<8x1xf32>
    %45 = arith.maximumf %44, %42 : vector<8x1xf32>
    %46 = arith.subf %12, %45 : vector<8x1xf32>
    %47 = math.exp %46 : vector<8x1xf32>
    %48 = arith.subf %22, %45 : vector<8x1xf32>
    %49 = math.exp %48 : vector<8x1xf32>
    %50 = arith.subf %32, %45 : vector<8x1xf32>
    %51 = math.exp %50 : vector<8x1xf32>
    %52 = arith.subf %42, %45 : vector<8x1xf32>
    %53 = math.exp %52 : vector<8x1xf32>
    %54 = arith.addf %47, %49 : vector<8x1xf32>
    %55 = arith.addf %54, %51 : vector<8x1xf32>
    %56 = arith.addf %55, %53 : vector<8x1xf32>
    %cst_21 = arith.constant 1.000000e+00 : f32
    %57 = vector.broadcast %cst_21 : f32 to vector<8x1xf32>
    %58 = arith.divf %57, %56 : vector<8x1xf32>
    %cst_22 = arith.constant 0.000000e+00 : f32
    %59 = vector.broadcast %cst_22 : f32 to vector<8x32xf32>
    %60 = arith.mulf %47, %58 : vector<8x1xf32>
    %c0_23 = arith.constant 0 : index
    %c0_24 = arith.constant 0 : index
    %c0_25 = arith.constant 0 : index
    %61 = vector.load %arg1[%c0_23, %c0_24, %c0_25] : memref<8x4x32xf32, #tpu.memory_space<vmem>>, vector<8x1x32xf32>
    %62 = vector.shape_cast %61 : vector<8x1x32xf32> to vector<8x32xf32>
    %63 = vector.broadcast %60 : vector<8x1xf32> to vector<8x32xf32>
    %64 = arith.mulf %63, %62 : vector<8x32xf32>
    %65 = arith.addf %59, %64 : vector<8x32xf32>
    %66 = arith.mulf %49, %58 : vector<8x1xf32>
    %c0_26 = arith.constant 0 : index
    %c1_27 = arith.constant 1 : index
    %c0_28 = arith.constant 0 : index
    %67 = vector.load %arg1[%c0_26, %c1_27, %c0_28] : memref<8x4x32xf32, #tpu.memory_space<vmem>>, vector<8x1x32xf32>
    %68 = vector.shape_cast %67 : vector<8x1x32xf32> to vector<8x32xf32>
    %69 = vector.broadcast %66 : vector<8x1xf32> to vector<8x32xf32>
    %70 = arith.mulf %69, %68 : vector<8x32xf32>
    %71 = arith.addf %65, %70 : vector<8x32xf32>
    %72 = arith.mulf %51, %58 : vector<8x1xf32>
    %c0_29 = arith.constant 0 : index
    %c2_30 = arith.constant 2 : index
    %c0_31 = arith.constant 0 : index
    %73 = vector.load %arg1[%c0_29, %c2_30, %c0_31] : memref<8x4x32xf32, #tpu.memory_space<vmem>>, vector<8x1x32xf32>
    %74 = vector.shape_cast %73 : vector<8x1x32xf32> to vector<8x32xf32>
    %75 = vector.broadcast %72 : vector<8x1xf32> to vector<8x32xf32>
    %76 = arith.mulf %75, %74 : vector<8x32xf32>
    %77 = arith.addf %71, %76 : vector<8x32xf32>
    %78 = arith.mulf %53, %58 : vector<8x1xf32>
    %c0_32 = arith.constant 0 : index
    %c3_33 = arith.constant 3 : index
    %c0_34 = arith.constant 0 : index
    %79 = vector.load %arg1[%c0_32, %c3_33, %c0_34] : memref<8x4x32xf32, #tpu.memory_space<vmem>>, vector<8x1x32xf32>
    %80 = vector.shape_cast %79 : vector<8x1x32xf32> to vector<8x32xf32>
    %81 = vector.broadcast %78 : vector<8x1xf32> to vector<8x32xf32>
    %82 = arith.mulf %81, %80 : vector<8x32xf32>
    %83 = arith.addf %77, %82 : vector<8x32xf32>
    %c0_35 = arith.constant 0 : index
    %c0_36 = arith.constant 0 : index
    %84 = vector.load %arg5[%c0_35, %c0_36] : memref<8x32xf32, #tpu.memory_space<vmem>>, vector<8x32xf32>
    tpu.vector_store %arg5[%c0_35, %c0_36], %83 {strides = array<i32>} : memref<8x32xf32, #tpu.memory_space<vmem>>, vector<8x32xf32>,
    return
  }
  func.func @transform_0(%arg0: i32) -> (i32, i32, i32) {
    %c0_i32 = arith.constant 0 : i32
    %c0_i32_0 = arith.constant 0 : i32
    %c0_i32_1 = arith.constant 0 : i32
    return %arg0, %c0_i32, %c0_i32_0 : i32, i32, i32
  }
  func.func @transform_1(%arg0: i32) -> (i32, i32) {
    %c0_i32 = arith.constant 0 : i32
    %c0_i32_0 = arith.constant 0 : i32
    %c0_i32_1 = arith.constant 0 : i32
    return %c0_i32, %c0_i32_0 : i32, i32
  }
  func.func @transform_2(%arg0: i32) -> (i32, i32) {
    %c0_i32 = arith.constant 0 : i32
    %c0_i32_0 = arith.constant 0 : i32
    %c0_i32_1 = arith.constant 0 : i32
    return %c0_i32, %c0_i32_0 : i32, i32
  }
  func.func @transform_3(%arg0: i32) -> (i32, i32) {
    %c0_i32 = arith.constant 0 : i32
    %c0_i32_0 = arith.constant 0 : i32
    %c0_i32_1 = arith.constant 0 : i32
    return %c0_i32, %c0_i32_0 : i32, i32
  }
  func.func @transform_4(%arg0: i32) -> (i32, i32) {
    %c0_i32 = arith.constant 0 : i32
    %c0_i32_0 = arith.constant 0 : i32
    return %arg0, %c0_i32 : i32, i32
  }
}

</mosaic_0001>

<bundles_post_ra>
// kernel: tpu_custom_call.1
= control target key start
LH: loop header
LB: loop body
LE: loop exit
PB: predicated region body
PF: predicated region fallthrough
CT: control target
= control target key end

     0   :  { %9 = vsyncpa [#allocation3], 0  ;;  %s1487_s0 = inlined_call_operand.hbm [shape: f32[16,4,32], index: 0, kind: input, shape index: {}]   ;;  %s1488_s1 = inlined_call_operand.hbm [shape: f32[32,128], index: 1, kind: input, shape index: {}]   ;;  %s1489_s2 = inlined_call_operand.vmem [shape: f32[1,128], index: 2, kind: input, shape index: {}]   ;;  %s1490_s3 = inlined_call_operand.vmem [shape: f32[1,128], index: 3, kind: input, shape index: {}]   ;;  %s1491_s4 = inlined_call_operand.hbm [shape: f32[16,32], index: 4, kind: output, shape index: {}]  }
   0x1   :  { %11 = vsyncpa [#allocation3 + $0x1], 0 }
   0x2   :  { %12 = vsyncpa [#allocation6], 0 }
   0x3   :  { %13 = vsyncpa [#allocation4], 0 }
   0x4   :  { %15 = vsyncpa [#allocation4 + $0x1], 0  ;;  %s1170_s15 = smov 0   ;;  %s1172_s16 = smov 0  }
   0x5   :  { %s1174_s17 = smov 0   ;;  %s1176_s18 = smov 0  }
   0x6 LB: > { %s1191_s19 = sadd.s32 4294967295, %s1133_s18   ;;  %s813_s20 = sadd.s32 4294967294, %s1133_s18   ;;  %s1133_s18 = sphi %s1176_s18, %s1511_s18   ;;  %s1129_s17 = sphi %s1174_s17, %s1510_s17   ;;  %s1125_s16 = sphi %s1172_s16, %s1509_s16   ;;  %s1121_s15 = sphi %s1170_s15, %s1508_s15  }
   0x7   : > { %p41_p0 = scmp.ne.s32.totalorder %s1125_s16, %s1121_s15  ;;  %p1492_p1 = scmp.eq.s32.totalorder %s1191_s19, 0 }
   0x8   : > { %p134_p3 = scmp.eq.s32.totalorder %s813_s20, 1  ;;  %p814_p5 = scmp.ge.s32.totalorder %s1133_s18, 1 }
   0x9   : > { %p1200_p4 = por %p1492_p1, %p41_p0  ;;  %p141_p7 = scmp.lt.s32.totalorder %s1133_s18, 3 }
   0xa   : > { %p1205_p6 = por %p134_p3, %p41_p0  ;;  %s1135_s24 = smov [#allocation5]  }
   0xb   : > { %s1495_s21 = scalar_select %p1200_p4, 1, 0 }
   0xc   : > { %s1496_s22 = scalar_select %p1205_p6, 1, 0 }
   0xd   : > { %p1210_p8 = pnand %p814_p5, %p141_p7  ;;  %s153_s25 = sshll.u32 %s1135_s24, 4  ;;  %s1214_s25 = int_to_ptr.vmem [resolvable:$true] %s153_s25 }
   0xe   : > { %s1226_s27 = sadd.s32 1, %s1133_s18   ;;  %s28_s28 = sadd.s32 1, %s1129_s17 }
   0xf   : > { %s1497_s23 = scalar_select %p1210_p8, 1, 0 }
  0x10   : > { %p931_p9 = pneg %p1210_p8  ;;  %s25_s29 = ssub.s32 %s1133_s18, %s1226_s27 }
  0x11   : > { %s1005_s6 = scalar_lea.hbm %s1488_s1, 512 }
  0x12   : > { %p1221_p11 = pnand %p931_p9, %p1492_p1  ;;  %p1006_p12 = scmp.ne.s32.totalorder %s1488_s1, %s1005_s6 }
  0x13   : > { %p1012_p5 = scmp.lt.u32.totalorder %s1005_s6, %s1488_s1 }
  0x14   : > { %p1007_p13 = pneg %p1221_p11 }
  0x16   : > { %p1008_p0 = pnand %p1007_p13, %p1006_p12 }
  0x18   : > { %p1009_p3 = pneg %p1008_p0 }
  0x1a   : > { %p1014_p7 = pnand %p1012_p5, %p1009_p3 }
  0x1c   : > { %1017 = shalt.err (!%p1014_p7)
}
  0x1d   : > { %s1018_s11 = scalar_lea.vmem %s1214_s25, 512  ;;  %p1026_p2 = scmp.lt.s32.totalorder %s1214_s25, %s1214_s25 }
  0x1e   : > { %p1019_p9 = scmp.ne.s32.totalorder %s1214_s25, %s1018_s11  ;;  %p1027_p6 = scmp.lt.s32.totalorder %s1018_s11, %s1018_s11 }
  0x20   : > { %p1021_p10 = pnand %p1019_p9, %p1007_p13  ;;  %p1028_p4 = por %p1027_p6, %p1026_p2 }
  0x22   : > { %p1022_p1 = pneg %p1021_p10 }
  0x24   : > { %p1029_p8 = pnand %p1028_p4, %p1022_p1 }
  0x26   : > { %1032 = shalt.err (!%p1029_p8)
}
  0x27   : > { %s1136_s12 = smov 128   ;;  %s1137_s13 = smov 8  }
  0x28   : > { %934 = dma.hbm_to_vmem [thread:$0]  (!%p1221_p11), %s1488_s1, 512, %s1214_s25, [#allocation6], %s1136_s12, %s1136_s12, %s1137_s13  }
  0x29   : > { %p26_p2 = scmp.eq.s32.totalorder %s25_s29, 0  ;;  %p35_p1 = scmp.ne.s32.totalorder %s1129_s17, %s1125_s16 }
  0x2a   : > { %p36_p4 = scmp.eq.s32.totalorder %s1133_s18, 0  ;;  %p944_p6 = scmp.lt.s32.totalorder %s1133_s18, 2 }
  0x2b   : > { %s1257_s24 = scalar_select %p26_p2, %s1129_s17, %s28_s28  }
  0x2c   : > { %p37_p8 = por %p36_p4, %p35_p1  ;;  %p1499_p10 = scmp.eq.s32.totalorder %s1191_s19, 1 }
  0x2d   : > { %s173_s5 = sand.u32 1, %s1129_s17   ;;  %s834_s6 = sshll.u32 %s1133_s18, 9 }
  0x2e   : > { %p1261_p12 = por %p1499_p10, %p35_p1  ;;  %s817_s7 = sshll.u32 %s173_s5, 5 }
  0x2f   : > { %s1270_s9 = scalar_lea.hbm %s1487_s0, %s834_s6  ;;  %s177_s25 = scalar_lea.vmem [#allocation2], %s817_s7 }
  0x30   : > { %s184_s28 = sshll.u32 %s177_s25, 4  ;;  %p1272_p11 = pnand %p944_p6, %p37_p8  ;;  %s1276_s28 = int_to_ptr.vmem [resolvable:$true] %s184_s28 }
  0x31   : > { %s1278_s10 = scalar_lea.sflag [#allocation3], %s173_s5  ;;  %s1033_s11 = scalar_lea.hbm %s1270_s9, 512 }
  0x32   : > { %p1034_p13 = scmp.ne.s32.totalorder %s1270_s9, %s1033_s11  ;;  %p1035_p0 = pneg %p1272_p11 }
  0x33   : > { %s1038_s14 = scalar_lea.hbm %s1487_s0, 1024  ;;  %p1039_p7 = scmp.lt.u32.totalorder %s1270_s9, %s1487_s0 }
  0x34   : > { %p1036_p3 = pnand %p1035_p0, %p1034_p13  ;;  %p1040_p9 = scmp.lt.u32.totalorder %s1038_s14, %s1033_s11 }
  0x35   : > { %p1042_p1 = scmp.lt.u32.totalorder %s1033_s11, %s1270_s9 }
  0x36   : > { %p1037_p5 = pneg %p1036_p3  ;;  %p1041_p2 = por %p1040_p9, %p1039_p7 }
  0x38   : > { %p1043_p4 = por %p1042_p1, %p1041_p2 }
  0x3a   : > { %p1044_p6 = pnand %p1043_p4, %p1037_p5 }
  0x3c   : > { %1047 = shalt.err (!%p1044_p6)
}
  0x3d   : > { %s1048_s5 = scalar_lea.vmem %s1276_s28, 512  ;;  %s1138_s7 = smov [#allocation2]  }
  0x3e   : > { %p1049_p8 = scmp.ne.s32.totalorder %s1276_s28, %s1048_s5  ;;  %s1053_s26 = sshll.u32 %s1138_s7, 4  ;;  %s1054_s26 = int_to_ptr.vmem [resolvable:$false] %s1053_s26 }
  0x3f   : > { %s1055_s8 = scalar_lea.vmem %s1054_s26, 1024  ;;  %p1056_p3 = scmp.lt.s32.totalorder %s1276_s28, %s1054_s26 }
  0x40   : > { %p1051_p10 = pnand %p1049_p8, %p1035_p0  ;;  %p1057_p7 = scmp.lt.s32.totalorder %s1055_s8, %s1048_s5 }
  0x42   : > { %p1052_p13 = pneg %p1051_p10  ;;  %p1058_p9 = por %p1057_p7, %p1056_p3 }
  0x44   : > { %p1059_p2 = pnand %p1058_p9, %p1052_p13 }
  0x46   : > { %1062 = shalt.err (!%p1059_p2)
}
  0x47   : > { %s1139_s25 = smov 64   ;;  %s1140_s11 = smov 4  }
  0x48   : > { %938 = dma.hbm_to_vmem [thread:$0]  (!%p1272_p11), %s1270_s9, 512, %s1276_s28, %s1278_s10, %s1139_s25, %s1139_s25, %s1140_s11  }
  0x49   : > { %p1502_p0 = scmp.ne.s32.totalorder %s1497_s23, 0 }
  0x4a   : > { %s1309_s12 = sand.u32 (!%p1502_p0), 1, %s1125_s16   ;;  %p1503_p5 = scmp.ne.s32.totalorder (!%p1502_p0), %s1495_s21, 0 }
  0x4b   : > { %196 = sbr.rel (%p1502_p0) target bundleno = 540 (0x21c), region = 36  ;;  %s821_s13 = sshll.u32 (!%p1502_p0), %s1309_s12, 5 }
  0x4c   : > { %s199_s14 = scalar_lea.sflag (!%p1502_p0), [#allocation3], %s1309_s12  ;;  %s1313_s20 = scalar_lea.vmem (!%p1502_p0), [#allocation2], %s821_s13 }
  0x52   : > { %1108 = dma.done.wait (%p1503_p5), %s199_s14, 512  }
  0x53   : > { %1110 = vsyncadd (%p1503_p5), %s199_s14, 4294966784  ;;  %p1504_p11 = scmp.eq.s32.totalorder %s1191_s19, 0 }
  0x55   : > { %1112 = dma.done.wait (%p1504_p11), [#allocation6], 512   ;;  %p1505_p1 = pmov %p1504_p11 }
  0x56   : > { %v1141_v0 = vmov 0.0|0.0   ;;  %vm1142_vm0 = vmmov 0   ;;  %v1143_v1 = vmov 0.0   ;;  %vm261_vm1 = vcmask 1041409   ;;  %v232_v2 = vld [vmem:[#allocation5] sm:$0xff]  ;;  %v233_v3 = vld [vmem:[#allocation5 + $0x8] sm:$0xff] }
  0x57   : > { %1114 = vsyncadd (%p1505_p1), [#allocation6], 4294966784  ;;  %899 = vmatprep.subr.bf16.mxu0 %v1141_v0  ;;  %905 = vmatprep.subr.bf16.mxu1 %v1141_v0  ;;  %vm264_vm2 = vcmask 1042434   ;;  %vm267_vm3 = vcmask 1043459   ;;  %v234_v4 = vld [vmem:[#allocation5 + $0x10] sm:$0xff]  ;;  %vm270_vm4 = vcmask 1044484   ;;  %v1329_v5 = vpack.c.bf16 %v233_v3, %v232_v2 }
  0x58   : > { %863 = vmatprep.mubr.msk.f32.mxu0 %vm1142_vm0, %v1143_v1  ;;  %874 = vmatprep.mubr.msk.f32.mxu1 %vm1142_vm0, %v1143_v1  ;;  %vm273_vm5 = vcmask 1045509   ;;  %vm276_vm6 = vcmask 1046534   ;;  %v235_v6 = vld [vmem:[#allocation5 + $0x18] sm:$0xff]  ;;  %v238_v7 = vld [vmem:[%s1313_s20] sm:$0x1]  ;;  %vm279_vm7 = vcmask 1047559  }
  0x59   : > { %v239_v8 = vld [vmem:[%s1313_s20 + $0x4] sm:$0x1]  ;;  %v240_v9 = vld [vmem:[%s1313_s20 + $0x8] sm:$0x1]  ;;  %v241_v10 = vld [vmem:[%s1313_s20 + $0xc] sm:$0x1]  ;;  %901 = vmatpush3.bf16.msra.mxu0 %v1329_v5  ;;  %907 = vmatpush3.bf16.msra.mxu1 %v1329_v5  ;;  %v1338_v12 = vpack.c.bf16 %v235_v6, %v234_v4 }
  0x5a   : > { %v242_v11 = vld [vmem:[%s1313_s20 + $0x10] sm:$0x1]  ;;  %v243_v13 = vld [vmem:[%s1313_s20 + $0x14] sm:$0x1]  ;;  %v244_v14 = vld [vmem:[%s1313_s20 + $0x18] sm:$0x1]  ;;  %902 = vmatprep.subr.bf16.mxu0 %v1141_v0  ;;  %908 = vmatprep.subr.bf16.mxu1 %v1141_v0 }
  0x5b   : > { %v245_v15 = vld [vmem:[%s1313_s20 + $0x1c] sm:$0x1]  ;;  %v260_v16 = vrot.slane %v239_v8, 7  ;;  %v263_v17 = vrot.slane %v240_v9, 6  ;;  %v266_v18 = vrot.slane %v241_v10, 5  ;;  %vm281_vm8 = vcmask 261120  }
  0x5c   : > { %v269_v19 = vrot.slane %v242_v11, 4  ;;  %v272_v20 = vrot.slane %v243_v13, 3  ;;  %v275_v21 = vrot.slane %v244_v14, 2  ;;  %v278_v22 = vrot.slane %v245_v15, 1  ;;  %v364_v23 = vld [vmem:[%s1313_s20 + $0x1] sm:$0x1] }
  0x5d   : > { %v365_v24 = vld [vmem:[%s1313_s20 + $0x5] sm:$0x1]  ;;  %v262_v25 = vsel %vm261_vm1, %v260_v16, %v238_v7  ;;  %v366_v26 = vld [vmem:[%s1313_s20 + $0x9] sm:$0x1]  ;;  %v367_v27 = vld [vmem:[%s1313_s20 + $0xd] sm:$0x1]  ;;  %904 = vmatpush3.bf16.msra.mxu0 %v1338_v12  ;;  %910 = vmatpush3.bf16.msra.mxu1 %v1338_v12 }
  0x5e   : > { %v368_v28 = vld [vmem:[%s1313_s20 + $0x11] sm:$0x1]  ;;  %v265_v29 = vsel %vm264_vm2, %v263_v17, %v262_v25  ;;  %v369_v30 = vld [vmem:[%s1313_s20 + $0x15] sm:$0x1]  ;;  %v370_v31 = vld [vmem:[%s1313_s20 + $0x19] sm:$0x1]  ;;  %911 = vmatprep.subr.bf16.mxu0 %v1141_v0  ;;  %917 = vmatprep.subr.bf16.mxu1 %v1141_v0 }
  0x5f   : > { %v371_v32 = vld [vmem:[%s1313_s20 + $0x1d] sm:$0x1]  ;;  %v268_v33 = vsel %vm267_vm3, %v266_v18, %v265_v29  ;;  %v380_v34 = vrot.slane %v365_v24, 7  ;;  %v382_v35 = vrot.slane %v366_v26, 6  ;;  %v384_v36 = vrot.slane %v367_v27, 5  ;;  %s823_s29 = sshll.u32 %s1309_s12, 3 }
  0x60   : > { %v470_v37 = vld [vmem:[%s1313_s20 + $0x2] sm:$0x1]  ;;  %v271_v38 = vsel %vm270_vm4, %v269_v19, %v268_v33  ;;  %v386_v39 = vrot.slane %v368_v28, 4  ;;  %v388_v40 = vrot.slane %v369_v30, 3  ;;  %v390_v41 = vrot.slane %v370_v31, 2  ;;  %s831_s10 = sshll.u32 %s1191_s19, 7 }
  0x61   : > { %v471_v42 = vld [vmem:[%s1313_s20 + $0x6] sm:$0x1]  ;;  %v274_v43 = vsel %vm273_vm5, %v272_v20, %v271_v38  ;;  %v381_v44 = vsel %vm261_vm1, %v380_v34, %v364_v23  ;;  %v392_v45 = vrot.slane %v371_v32, 1  ;;  %v472_v46 = vld [vmem:[%s1313_s20 + $0xa] sm:$0x1]  ;;  %s230_s6 = scalar_lea.vmem [#allocation7], %s823_s29  ;;  %s1442_s8 = scalar_lea.hbm %s1491_s4, %s831_s10 }
  0x62   : > { %v473_v47 = vld [vmem:[%s1313_s20 + $0xe] sm:$0x1]  ;;  %v486_v48 = vrot.slane %v471_v42, 7  ;;  %v277_v49 = vsel %vm276_vm6, %v275_v21, %v274_v43  ;;  %v383_v50 = vsel %vm264_vm2, %v382_v35, %v381_v44  ;;  %v474_v51 = vld [vmem:[%s1313_s20 + $0x12] sm:$0x1]  ;;  %v488_v58 = vrot.slane %v472_v46, 6 }
  0x63   : > { %v475_v52 = vld [vmem:[%s1313_s20 + $0x16] sm:$0x1]  ;;  %v476_v53 = vld [vmem:[%s1313_s20 + $0x1a] sm:$0x1]  ;;  %v1373_v54 = vsel %vm279_vm7, %v278_v22, %v277_v49  ;;  %v385_v55 = vsel %vm267_vm3, %v384_v36, %v383_v50  ;;  %v477_v56 = vld [vmem:[%s1313_s20 + $0x1e] sm:$0x1] }
  0x64   : > { %v487_v57 = vsel %vm261_vm1, %v486_v48, %v470_v37  ;;  %864 = vmatmul.mubr.msk.f32.vlgmr.msra.gmra.mrb[0].mxu0 %vm281_vm8, %v1373_v54  ;;  %v387_v59 = vsel %vm270_vm4, %v386_v39, %v385_v55  ;;  %v490_v60 = vrot.slane %v473_v47, 5  ;;  %v492_v61 = vrot.slane %v474_v51, 4  ;;  %v576_v63 = vld [vmem:[%s1313_s20 + $0x3] sm:$0x1]  ;;  %v577_v2 = vld [vmem:[%s1313_s20 + $0x7] sm:$0x1] }
  0x65   : > { %v494_v62 = vrot.slane %v475_v52, 3  ;;  %913 = vmatpush3.bf16.msra.mxu0 %v1329_v5  ;;  %v389_v3 = vsel %vm273_vm5, %v388_v40, %v387_v59  ;;  %885 = vmatprep.mubr.msk.f32.mxu0 %vm1142_vm0, %v1143_v1  ;;  %v489_v4 = vsel %vm264_vm2, %v488_v58, %v487_v57  ;;  %v496_v6 = vrot.slane %v476_v53, 2  ;;  %v578_v7 = vld [vmem:[%s1313_s20 + $0xb] sm:$0x1]  ;;  %v579_v8 = vld [vmem:[%s1313_s20 + $0xf] sm:$0x1] }
  0x66   : > { %v391_v9 = vsel %vm276_vm6, %v390_v41, %v389_v3  ;;  %914 = vmatprep.subr.bf16.mxu0 %v1141_v0  ;;  %v491_v10 = vsel %vm267_vm3, %v490_v60, %v489_v4  ;;  %v498_v11 = vrot.slane %v477_v56, 1  ;;  %v580_v13 = vld [vmem:[%s1313_s20 + $0x13] sm:$0x1]  ;;  %v581_v14 = vld [vmem:[%s1313_s20 + $0x17] sm:$0x1]  ;;  %v592_v18 = vrot.slane %v577_v2, 7 }
  0x67   : > { %v1396_v15 = vsel %vm279_vm7, %v392_v45, %v391_v9  ;;  %v493_v16 = vsel %vm270_vm4, %v492_v61, %v491_v10  ;;  %v582_v17 = vld [vmem:[%s1313_s20 + $0x1b] sm:$0x1]  ;;  %v594_v19 = vrot.slane %v578_v7, 6  ;;  %v583_v21 = vld [vmem:[%s1313_s20 + $0x1f] sm:$0x1]  ;;  %v596_v22 = vrot.slane %v579_v8, 5 }
  0x68   : > { %875 = vmatmul.mubr.msk.f32.vlgmr.msra.gmra.mrb[0].mxu1 %vm281_vm8, %v1396_v15  ;;  %v495_v20 = vsel %vm273_vm5, %v494_v62, %v493_v16  ;;  %v598_v23 = vrot.slane %v580_v13, 4  ;;  %v593_v25 = vsel %vm261_vm1, %v592_v18, %v576_v63  ;;  %v600_v26 = vrot.slane %v581_v14, 3  ;;  %v826_v42 = vld [vmem:[%s1490_s3] ss:$0 sm:$0xff]  ;;  %s733_s5 = sshll.u32 %s230_s6, 4  ;;  %s720_s25 = scalar_lea.sflag [#allocation4], %s1309_s12  ;;  %s1444_s5 = int_to_ptr.vmem [resolvable:$true] %s733_s5 }
  0x69   : > { %919 = vmatpush3.bf16.msra.mxu1 %v1329_v5  ;;  %916 = vmatpush3.bf16.msra.mxu0 %v1338_v12  ;;  %v497_v24 = vsel %vm276_vm6, %v496_v6, %v495_v20  ;;  %v595_v28 = vsel %vm264_vm2, %v594_v19, %v593_v25  ;;  %v602_v29 = vrot.slane %v582_v17, 2  ;;  %v604_v30 = vrot.slane %v583_v21, 1  ;;  %s1063_s19 = scalar_lea.vmem %s1444_s5, 128  ;;  %s1144_s11 = smov [#allocation7]  }
  0x6a   : > { %920 = vmatprep.subr.bf16.mxu1 %v1141_v0  ;;  %v1410_v27 = vsel %vm279_vm7, %v498_v11, %v497_v24  ;;  %896 = vmatprep.mubr.msk.f32.mxu1 %vm1142_vm0, %v1143_v1  ;;  %v597_v5 = vsel %vm267_vm3, %v596_v22, %v595_v28  ;;  %v824_v1 = vld [vmem:[%s1489_s2] ss:$0 sm:$0xff]  ;;  %p1064_p4 = scmp.ne.s32.totalorder %s1444_s5, %s1063_s19  ;;  %s1067_s13 = sshll.u32 %s1144_s11, 4  ;;  %s1068_s13 = int_to_ptr.vmem [resolvable:$false] %s1067_s13 }
  0x6b   : > { %v599_v31 = vsel %vm270_vm4, %v598_v23, %v597_v5  ;;  %s1069_s14 = scalar_lea.vmem %s1068_s13, 256  ;;  %p1070_p10 = scmp.lt.s32.totalorder %s1444_s5, %s1068_s13 }
  0x6c   : > { %886 = vmatmul.mubr.msk.f32.vlgmr.msra.gmra.mrb[2].mxu0 %vm281_vm8, %v1410_v27  ;;  %v601_v0 = vsel %vm273_vm5, %v600_v26, %v599_v31  ;;  %p1065_p6 = pnand %p1064_p4, %p1261_p12  ;;  %p1071_p13 = scmp.lt.s32.totalorder %s1069_s14, %s1063_s19 }
  0x6d   : > { %922 = vmatpush3.bf16.msra.mxu1 %v1338_v12  ;;  %v603_v32 = vsel %vm276_vm6, %v602_v29, %v601_v0 }
  0x6e   : > { %v1423_v33 = vsel %vm279_vm7, %v604_v30, %v603_v32  ;;  %p1066_p8 = pneg %p1065_p6  ;;  %p1072_p3 = por %p1071_p13, %p1070_p10 }
  0x70   : > { %897 = vmatmul.mubr.msk.f32.vlgmr.msra.gmra.mrb[2].mxu1 %vm281_vm8, %v1423_v33  ;;  %p1073_p7 = pnand %p1072_p3, %p1066_p8 }
 0x137   : > { %v350_v34 = vpop.f32.mrb[0].mxu0 }
 0x138   : > { %v351_v35 = vadd.f32 %v824_v1, %v350_v34  ;;  %v865_v36 = vpop.f32.mrb[1].mxu0 }
 0x13a   : > { %987 = vtanh.f32 %v351_v35 }
 0x13b   : > { %v462_v37 = vpop.f32.mrb[0].mxu1 }
 0x13c   : > { %v463_v12 = vadd.f32 %v824_v1, %v462_v37  ;;  %v876_v38 = vpop.f32.mrb[1].mxu1 }
 0x13e   : > { %989 = vtanh.f32 %v463_v12 }
 0x13f   : > { %v568_v39 = vpop.f32.mrb[2].mxu0 }
 0x140   : > { %v569_v40 = vadd.f32 %v824_v1, %v568_v39  ;;  %v887_v41 = vpop.f32.mrb[3].mxu0 }
 0x142   : > { %991 = vtanh.f32 %v569_v40 }
 0x143   : > { %v674_v43 = vpop.f32.mrb[2].mxu1 }
 0x144   : > { %v988_v44 = vpop.eup %987  ;;  %v675_v45 = vadd.f32 %v824_v1, %v674_v43  ;;  %v898_v46 = vpop.f32.mrb[3].mxu1 }
 0x145   : > { %v361_v47 = vmul.f32 %v988_v44, %v826_v42 }
 0x146   : > { %993 = vtanh.f32 %v675_v45 }
 0x147   : > { %362 = vadd.xlane.f32.xlu0 %v361_v47 }
 0x148   : > { %v990_v48 = vpop.eup %989 }
 0x149   : > { %v467_v49 = vmul.f32 %v990_v48, %v826_v42 }
 0x14b   : > { %468 = vadd.xlane.f32.xlu0 %v467_v49 }
 0x14c   : > { %v992_v50 = vpop.eup %991 }
 0x14d   : > { %v573_v51 = vmul.f32 %v992_v50, %v826_v42 }
 0x14f   : > { %574 = vadd.xlane.f32.xlu1 %v573_v51 }
 0x150   : > { %v994_v52 = vpop.eup %993 }
 0x151   : > { %v679_v53 = vmul.f32 %v994_v52, %v826_v42 }
 0x153   : > { %680 = vadd.xlane.f32.xlu1 %v679_v53 }
 0x1d4   : > { %v363_v55 = vpop.xlane.xlu0 %362 }
 0x1d8   : > { %v469_v56 = vpop.xlane.xlu0 %468 }
 0x1d9   : > { %v682_v58 = vmax.f32 %v363_v55, %v469_v56 }
 0x1dc   : > { %v575_v57 = vpop.xlane.xlu1 %574 }
 0x1dd   : > { %v683_v59 = vmax.f32 %v682_v58, %v575_v57 }
 0x1e0   : > { %v681_v60 = vpop.xlane.xlu1 %680 }
 0x1e1   : > { %v684_v61 = vmax.f32 %v683_v59, %v681_v60 }
 0x1e3   : > { %v685_v62 = vsub.f32 %v363_v55, %v684_v61  ;;  %v688_v63 = vsub.f32 %v469_v56, %v684_v61  ;;  %v691_v2 = vsub.f32 %v575_v57, %v684_v61  ;;  %v694_v3 = vsub.f32 %v681_v60, %v684_v61 }
 0x1e5   : > { %v686_v4 = vmul.f32 1.442695, %v685_v62  ;;  %v689_v6 = vmul.f32 1.442695, %v688_v63  ;;  %v692_v7 = vmul.f32 1.442695, %v691_v2 }
 0x1e6   : > { %v695_v8 = vmul.f32 1.442695, %v694_v3 }
 0x1e7   : > { %995 = vpow2.f32 %v686_v4 }
 0x1e8   : > { %997 = vpow2.f32 %v689_v6 }
 0x1e9   : > { %999 = vpow2.f32 %v692_v7 }
 0x1ea   : > { %1001 = vpow2.f32 %v695_v8 }
 0x1f1   : > { %v996_v9 = vpop.eup %995 }
 0x1f2   : > { %v998_v10 = vpop.eup %997 }
 0x1f3   : > { %v697_v11 = vadd.f32 %v998_v10, %v996_v9  ;;  %v1000_v13 = vpop.eup %999 }
 0x1f4   : > { %v1002_v16 = vpop.eup %1001 }
 0x1f5   : > { %v698_v14 = vadd.f32 %v1000_v13, %v697_v11 }
 0x1f7   : > { %v699_v17 = vadd.f32 %v1002_v16, %v698_v14 }
 0x1f9   : > { %1003 = vrcp.f32 %v699_v17 }
 0x203   : > { %v1004_v18 = vpop.eup %1003 }
 0x204   : > { %v702_v19 = vmul.f32 %v1004_v18, %v996_v9  ;;  %v706_v20 = vmul.f32 %v1004_v18, %v998_v10  ;;  %v710_v21 = vmul.f32 %v1004_v18, %v1000_v13  ;;  %v714_v22 = vmul.f32 %v1004_v18, %v1002_v16 }
 0x206   : > { %v704_v23 = vmul.f32 %v702_v19, %v1373_v54  ;;  %v708_v24 = vmul.f32 %v706_v20, %v1396_v15  ;;  %v712_v26 = vmul.f32 %v710_v21, %v1410_v27  ;;  %v716_v28 = vmul.f32 %v714_v22, %v1423_v33 }
 0x208   : > { %v709_v25 = vadd.f32 %v708_v24, %v704_v23 }
 0x20a   : > { %v713_v29 = vadd.f32 %v712_v26, %v709_v25 }
 0x20c   : > { %v717_v5 = vadd.f32 %v716_v28, %v713_v29 }
 0x20e   : > { %718 = vst.msk [vmem:[%s230_s6] sm:$0xff] %vm281_vm8, %v717_v5 }
 0x20f   : > { %1076 = shalt.err (!%p1073_p7)
}
 0x210   : > { %s1077_s12 = scalar_lea.hbm %s1442_s8, 128  ;;  %s1081_s23 = scalar_lea.hbm %s1491_s4, 256 }
 0x211   : > { %p1078_p9 = scmp.ne.s32.totalorder %s1442_s8, %s1077_s12  ;;  %p1082_p5 = scmp.lt.u32.totalorder %s1442_s8, %s1491_s4 }
 0x212   : > { %p1083_p11 = scmp.lt.u32.totalorder %s1081_s23, %s1077_s12  ;;  %p1085_p4 = scmp.lt.u32.totalorder %s1077_s12, %s1442_s8 }
 0x213   : > { %p1079_p2 = pnand %p1078_p9, %p1261_p12 }
 0x214   : > { %p1084_p1 = por %p1083_p11, %p1082_p5 }
 0x215   : > { %p1080_p0 = pneg %p1079_p2 }
 0x216   : > { %p1086_p6 = por %p1085_p4, %p1084_p1 }
 0x218   : > { %p1087_p8 = pnand %p1086_p6, %p1080_p0 }
 0x21a   : > { %1090 = shalt.err (!%p1087_p8)
}
 0x21b   : > { %929 = dma.vmem_to_hbm [thread:$0]  (%p1261_p12), %s1444_s5, 128, %s1442_s8, %s720_s25  }
 0x21c PF: > { %s745_s29 = sand.u32 1, %s1121_s15   ;;  %p1506_p10 = scmp.ne.s32.totalorder %s1496_s22, 0 }
 0x21d   : > { %p1507_p13 = scmp.ge.s32.totalorder %s1133_s18, 2  ;;  %s746_s10 = scalar_lea.sflag [#allocation4], %s745_s29 }
 0x21f   : > { %p940_p3 = pnand %p1507_p13, %p1506_p10 }
 0x221   : > { %1116 = dma.done.wait (!%p940_p3), %s746_s10, 128  }
 0x222   : > { %1118 = vsyncadd (!%p940_p3), %s746_s10, 4294967168  ;;  %p18_p7 = scmp.ge.s32.totalorder %s1226_s27, 4   ;;  %s1508_s15 = smov %s1125_s16 }
 0x223   : > { %s1509_s16 = smov %s1129_s17  ;;  %s1510_s17 = smov %s1257_s24 }
 0x224   : > { %s1511_s18 = smov %s1226_s27  ;;  %20 = sbr.rel (!%p18_p7) target bundleno = 6 (0x6), region = 85 }
 0x22b   :  { %751 = vsyncpa [#allocation3], 1 }
 0x22c   :  { %753 = vsyncpa [#allocation3 + $0x1], 1 }
 0x22d   :  { %754 = vsyncpa [#allocation6], 1 }
 0x22e   :  { %755 = vsyncpa [#allocation4], 1 }
 0x22f   :  { %757 = vsyncpa [#allocation4 + $0x1], 1 }

</bundles_post_ra>
